<compile_context>
chip_gen: v6e
topology: v6e:2x2x1
jax: 0.10.0
libtpu: 0.0.40
codegen_flags: <defaults>
</compile_context>

<pallas_src>
import functools
import numpy as np
import jax
import jax.numpy as jnp
from jax.experimental import pallas as pl
from jax.experimental.pallas import tpu as pltpu


# ----------------------------------------------------------------------------
# Fused kernel: conv1(3x3 valid) + ReLU + conv2(3x3 valid) + ReLU, per image n.
#   x_ref  : (1, H,  W*Cin)            lane-dense input rows
#   w1_ref : (3, W*Cin,   W1*Cout)     banded conv1 weights (one slab per dy)
#   b1_ref : (1, W1*Cout)              conv1 bias tiled along W1
#   w2_ref : (3, W1*Cout, W2*Cout)     banded conv2 weights
#   b2_ref : (1, W2*Cout)              conv2 bias tiled along W2
#   o_ref  : (1, H2, W2*Cout)          output rows
# ----------------------------------------------------------------------------
def _double_conv_kernel(x_ref, w1_ref, b1_ref, w2_ref, b2_ref, o_ref, *, H):
    H1, H2 = H - 2, H - 4
    x = x_ref[0]                                             # (H, W*Cin)

    # ---- conv1: 3 banded matmuls (K = W*Cin), then bias + ReLU once ----
    acc1 = jnp.dot(x[0:H1, :], w1_ref[0], preferred_element_type=jnp.float32)
    acc1 = acc1 + jnp.dot(x[1:H1 + 1, :], w1_ref[1],
                          preferred_element_type=jnp.float32)
    acc1 = acc1 + jnp.dot(x[2:H1 + 2, :], w1_ref[2],
                          preferred_element_type=jnp.float32)
    mid = jnp.maximum(acc1 + b1_ref[...], 0.0)               # (H1, W1*Cout)

    # ---- conv2: 3 banded matmuls (K = W1*Cout), then bias + ReLU once ----
    acc2 = jnp.dot(mid[0:H2, :], w2_ref[0], preferred_element_type=jnp.float32)
    acc2 = acc2 + jnp.dot(mid[1:H2 + 1, :], w2_ref[1],
                          preferred_element_type=jnp.float32)
    acc2 = acc2 + jnp.dot(mid[2:H2 + 2, :], w2_ref[2],
                          preferred_element_type=jnp.float32)
    o_ref[0] = jnp.maximum(acc2 + b2_ref[...], 0.0)          # (H2, W2*Cout)


# ----------------------------------------------------------------------------
# Wrapper-side parameter prep: block-banded (Toeplitz-in-W) weight slabs.
#   band[dy, wi*Cin + ci, wo*Cout + co] = w_torch[co, ci, dy, wi - wo]
#   (zero when wi - wo is not in {0, 1, 2}).
# Built with one einsum against a static 0/1 selection mask.
# ----------------------------------------------------------------------------
def _banded_weights(w_torch, w_in, w_out):
    c_out, c_in = w_torch.shape[0], w_torch.shape[1]
    # Static selection mask S[dx, wi, wo] = 1 iff wi - wo == dx.
    sel = np.zeros((3, w_in, w_out), dtype=np.float32)
    for dx in range(3):
        for wo in range(w_out):
            sel[dx, wo + dx, wo] = 1.0
    sel = jnp.asarray(sel, dtype=w_torch.dtype)
    w_t = jnp.transpose(w_torch, (2, 3, 1, 0))               # (3, 3, Cin, Cout)
    band = jnp.einsum('yxio,xab->yaibo', w_t, sel)           # (3, Win, Cin, Wout, Cout)
    return band.reshape(3, w_in * c_in, w_out * c_out)


def unet_intermediary_forward(x_nchw, params):
    """x_nchw: (N, Cin, H, W); params = (w1, b1, w2, b2) in PyTorch layouts."""
    w1, b1, w2, b2 = params
    N, Cin, H, W = x_nchw.shape
    Cout = w1.shape[0]
    H1, W1 = H - 2, W - 2
    H2, W2 = H - 4, W - 4

    # NCHW -> NHWC, flattened to (N, H, W*Cin): lane axis = W*Cin (dense).
    x = jnp.transpose(x_nchw, (0, 2, 3, 1)).reshape(N, H, W * Cin)

    w1b = _banded_weights(w1, W, W1)                         # (3, W*Cin,   W1*Cout)
    w2b = _banded_weights(w2, W1, W2)                        # (3, W1*Cout, W2*Cout)
    b1t = jnp.tile(b1, W1).reshape(1, W1 * Cout)
    b2t = jnp.tile(b2, W2).reshape(1, W2 * Cout)

    kern = functools.partial(_double_conv_kernel, H=H)

    # TODO(synk): at production H/W/C the banded slabs + whole-image block
    # outgrow VMEM (v7x's 64 MiB first); switch to row-band tiling with a
    # 4-row halo, per-tap slab matmuls, and set vmem_limit_bytes. Also pad the
    # output lane dim to a multiple of 128 there to avoid masked vst.msk.
    out2d = pl.pallas_call(
        kern,
        out_shape=jax.ShapeDtypeStruct((N, H2, W2 * Cout), jnp.float32),
        grid=(N,),
        in_specs=[
            pl.BlockSpec((1, H, W * Cin), lambda n: (n, 0, 0)),
            pl.BlockSpec((3, W * Cin, W1 * Cout), lambda n: (0, 0, 0)),
            pl.BlockSpec((1, W1 * Cout), lambda n: (0, 0)),
            pl.BlockSpec((3, W1 * Cout, W2 * Cout), lambda n: (0, 0, 0)),
            pl.BlockSpec((1, W2 * Cout), lambda n: (0, 0)),
        ],
        out_specs=pl.BlockSpec((1, H2, W2 * Cout), lambda n: (n, 0, 0)),
        compiler_params=pltpu.CompilerParams(
            dimension_semantics=("parallel",)),
    )(x, w1b, b1t, w2b, b2t)

    out = out2d.reshape(N, H2, W2, Cout)
    return jnp.transpose(out, (0, 3, 1, 2))                  # back to NCHW


# ----------------------------------------------------------------------------
# Pure-numpy (float64) reference of the PyTorch forward, for a sanity check.
# ----------------------------------------------------------------------------
def _ref_forward_numpy(x, w1, b1, w2, b2):
    def conv3x3(inp, wc, bc):
        n, _, hc, wcol = inp.shape
        out = np.zeros((n, wc.shape[0], hc - 2, wcol - 2), np.float64)
        for dy in range(3):
            for dx in range(3):
                out += np.einsum('nchw,dc->ndhw',
                                 inp[:, :, dy:dy + hc - 2, dx:dx + wcol - 2],
                                 wc[:, :, dy, dx])
        return out + bc[None, :, None, None]

    h = np.maximum(conv3x3(x, w1, b1), 0.0)
    return np.maximum(conv3x3(h, w2, b2), 0.0)


if __name__ == "__main__":
    # in_size=(16,16), in_channels=8, out_channels=4, batch=2
    N, Cin, Cout, H, W = 2, 8, 4, 16, 16
    key = jax.random.PRNGKey(0)
    ks = jax.random.split(key, 5)

    x = jax.random.normal(ks[0], (N, Cin, H, W), jnp.float32)
    w1 = jax.random.normal(ks[1], (Cout, Cin, 3, 3), jnp.float32) * 0.1   # conv1
    b1 = jax.random.normal(ks[2], (Cout,), jnp.float32) * 0.1
    w2 = jax.random.normal(ks[3], (Cout, Cout, 3, 3), jnp.float32) * 0.1  # conv2
    b2 = jax.random.normal(ks[4], (Cout,), jnp.float32) * 0.1
    params = (w1, b1, w2, b2)

    fwd = jax.jit(unet_intermediary_forward)
    out = jax.block_until_ready(fwd(x, params))
    assert out.shape == (N, Cout, H - 4, W - 4)

    ref = _ref_forward_numpy(
        np.asarray(x, np.float64),
        np.asarray(w1, np.float64), np.asarray(b1, np.float64),
        np.asarray(w2, np.float64), np.asarray(b2, np.float64))
    np.testing.assert_allclose(np.asarray(out), ref, rtol=2e-2, atol=2e-2)

    print("KERNEL_OK")
</pallas_src>

<mosaic_0001>
module attributes {stable_mosaic.version = 11 : i64} {
  func.func @_double_conv_kernel(%arg0: i32, %arg1: memref<1x16x128xf32, #tpu.memory_space<vmem>>, %arg2: memref<3x128x56xf32, #tpu.memory_space<vmem>>, %arg3: memref<1x56xf32, #tpu.memory_space<vmem>>, %arg4: memref<3x56x48xf32, #tpu.memory_space<vmem>>, %arg5: memref<1x48xf32, #tpu.memory_space<vmem>>, %arg6: memref<1x12x48xf32, #tpu.memory_space<vmem>>) attributes {dimension_semantics = [#tpu.dimension_semantics<parallel>], iteration_bounds = array<i64: 2>, scalar_prefetch = 0 : i64, scratch_operands = 0 : i64, tpu.core_type = #tpu.core_type<tc>, window_params = [{transform_indices = @transform_0, window_bounds = array<i64: 1, 16, 128>}, {pipeline_mode = #tpu.pipeline_mode<synchronous>, transform_indices = @transform_1, window_bounds = array<i64: 3, 128, 56>}, {pipeline_mode = #tpu.pipeline_mode<synchronous>, transform_indices = @transform_2, window_bounds = array<i64: 1, 56>}, {pipeline_mode = #tpu.pipeline_mode<synchronous>, transform_indices = @transform_3, window_bounds = array<i64: 3, 56, 48>}, {pipeline_mode = #tpu.pipeline_mode<synchronous>, transform_indices = @transform_4, window_bounds = array<i64: 1, 48>}, {transform_indices = @transform_5, window_bounds = array<i64: 1, 12, 48>}]} {
    %c0 = arith.constant 0 : index
    %c0_0 = arith.constant 0 : index
    %c0_1 = arith.constant 0 : index
    %0 = vector.load %arg1[%c0, %c0_0, %c0_1] : memref<1x16x128xf32, #tpu.memory_space<vmem>>, vector<1x16x128xf32>
    %1 = vector.shape_cast %0 : vector<1x16x128xf32> to vector<16x128xf32>
    %2 = vector.extract_strided_slice %1 {offsets = [0, 0], sizes = [14, 128], strides = [1, 1]} : vector<16x128xf32> to vector<14x128xf32>
    %c0_2 = arith.constant 0 : index
    %c0_3 = arith.constant 0 : index
    %c0_4 = arith.constant 0 : index
    %3 = vector.load %arg2[%c0_2, %c0_3, %c0_4] : memref<3x128x56xf32, #tpu.memory_space<vmem>>, vector<1x128x56xf32>
    %4 = vector.shape_cast %3 : vector<1x128x56xf32> to vector<128x56xf32>
    %cst = arith.constant dense<0.000000e+00> : vector<14x56xf32>
    %5 = tpu.matmul %2, %4, %cst {dimension_numbers = #tpu.dot_dimension_numbers<[1], [0], [0], [1], [0, 0, 1, 1], [], []>} : vector<14x128xf32>, vector<128x56xf32>, vector<14x56xf32> -> vector<14x56xf32>
    %6 = vector.extract_strided_slice %1 {offsets = [1, 0], sizes = [14, 128], strides = [1, 1]} : vector<16x128xf32> to vector<14x128xf32>
    %c1 = arith.constant 1 : index
    %c0_5 = arith.constant 0 : index
    %c0_6 = arith.constant 0 : index
    %7 = vector.load %arg2[%c1, %c0_5, %c0_6] : memref<3x128x56xf32, #tpu.memory_space<vmem>>, vector<1x128x56xf32>
    %8 = vector.shape_cast %7 : vector<1x128x56xf32> to vector<128x56xf32>
    %cst_7 = arith.constant dense<0.000000e+00> : vector<14x56xf32>
    %9 = tpu.matmul %6, %8, %cst_7 {dimension_numbers = #tpu.dot_dimension_numbers<[1], [0], [0], [1], [0, 0, 1, 1], [], []>} : vector<14x128xf32>, vector<128x56xf32>, vector<14x56xf32> -> vector<14x56xf32>
    %10 = arith.addf %5, %9 : vector<14x56xf32>
    %11 = vector.extract_strided_slice %1 {offsets = [2, 0], sizes = [14, 128], strides = [1, 1]} : vector<16x128xf32> to vector<14x128xf32>
    %c2 = arith.constant 2 : index
    %c0_8 = arith.constant 0 : index
    %c0_9 = arith.constant 0 : index
    %12 = vector.load %arg2[%c2, %c0_8, %c0_9] : memref<3x128x56xf32, #tpu.memory_space<vmem>>, vector<1x128x56xf32>
    %13 = vector.shape_cast %12 : vector<1x128x56xf32> to vector<128x56xf32>
    %cst_10 = arith.constant dense<0.000000e+00> : vector<14x56xf32>
    %14 = tpu.matmul %11, %13, %cst_10 {dimension_numbers = #tpu.dot_dimension_numbers<[1], [0], [0], [1], [0, 0, 1, 1], [], []>} : vector<14x128xf32>, vector<128x56xf32>, vector<14x56xf32> -> vector<14x56xf32>
    %15 = arith.addf %10, %14 : vector<14x56xf32>
    %c0_11 = arith.constant 0 : index
    %c0_12 = arith.constant 0 : index
    %16 = vector.load %arg3[%c0_11, %c0_12] : memref<1x56xf32, #tpu.memory_space<vmem>>, vector<1x56xf32>
    %17 = vector.broadcast %16 : vector<1x56xf32> to vector<14x56xf32>
    %18 = arith.addf %15, %17 : vector<14x56xf32>
    %cst_13 = arith.constant 0.000000e+00 : f32
    %19 = vector.broadcast %cst_13 : f32 to vector<14x56xf32>
    %20 = arith.maximumf %18, %19 : vector<14x56xf32>
    %21 = vector.extract_strided_slice %20 {offsets = [0, 0], sizes = [12, 56], strides = [1, 1]} : vector<14x56xf32> to vector<12x56xf32>
    %c0_14 = arith.constant 0 : index
    %c0_15 = arith.constant 0 : index
    %c0_16 = arith.constant 0 : index
    %22 = vector.load %arg4[%c0_14, %c0_15, %c0_16] : memref<3x56x48xf32, #tpu.memory_space<vmem>>, vector<1x56x48xf32>
    %23 = vector.shape_cast %22 : vector<1x56x48xf32> to vector<56x48xf32>
    %cst_17 = arith.constant dense<0.000000e+00> : vector<12x48xf32>
    %24 = tpu.matmul %21, %23, %cst_17 {dimension_numbers = #tpu.dot_dimension_numbers<[1], [0], [0], [1], [0, 0, 1, 1], [], []>} : vector<12x56xf32>, vector<56x48xf32>, vector<12x48xf32> -> vector<12x48xf32>
    %25 = vector.extract_strided_slice %20 {offsets = [1, 0], sizes = [12, 56], strides = [1, 1]} : vector<14x56xf32> to vector<12x56xf32>
    %c1_18 = arith.constant 1 : index
    %c0_19 = arith.constant 0 : index
    %c0_20 = arith.constant 0 : index
    %26 = vector.load %arg4[%c1_18, %c0_19, %c0_20] : memref<3x56x48xf32, #tpu.memory_space<vmem>>, vector<1x56x48xf32>
    %27 = vector.shape_cast %26 : vector<1x56x48xf32> to vector<56x48xf32>
    %cst_21 = arith.constant dense<0.000000e+00> : vector<12x48xf32>
    %28 = tpu.matmul %25, %27, %cst_21 {dimension_numbers = #tpu.dot_dimension_numbers<[1], [0], [0], [1], [0, 0, 1, 1], [], []>} : vector<12x56xf32>, vector<56x48xf32>, vector<12x48xf32> -> vector<12x48xf32>
    %29 = arith.addf %24, %28 : vector<12x48xf32>
    %30 = vector.extract_strided_slice %20 {offsets = [2, 0], sizes = [12, 56], strides = [1, 1]} : vector<14x56xf32> to vector<12x56xf32>
    %c2_22 = arith.constant 2 : index
    %c0_23 = arith.constant 0 : index
    %c0_24 = arith.constant 0 : index
    %31 = vector.load %arg4[%c2_22, %c0_23, %c0_24] : memref<3x56x48xf32, #tpu.memory_space<vmem>>, vector<1x56x48xf32>
    %32 = vector.shape_cast %31 : vector<1x56x48xf32> to vector<56x48xf32>
    %cst_25 = arith.constant dense<0.000000e+00> : vector<12x48xf32>
    %33 = tpu.matmul %30, %32, %cst_25 {dimension_numbers = #tpu.dot_dimension_numbers<[1], [0], [0], [1], [0, 0, 1, 1], [], []>} : vector<12x56xf32>, vector<56x48xf32>, vector<12x48xf32> -> vector<12x48xf32>
    %34 = arith.addf %29, %33 : vector<12x48xf32>
    %c0_26 = arith.constant 0 : index
    %c0_27 = arith.constant 0 : index
    %35 = vector.load %arg5[%c0_26, %c0_27] : memref<1x48xf32, #tpu.memory_space<vmem>>, vector<1x48xf32>
    %36 = vector.broadcast %35 : vector<1x48xf32> to vector<12x48xf32>
    %37 = arith.addf %34, %36 : vector<12x48xf32>
    %cst_28 = arith.constant 0.000000e+00 : f32
    %38 = vector.broadcast %cst_28 : f32 to vector<12x48xf32>
    %39 = arith.maximumf %37, %38 : vector<12x48xf32>
    %c0_29 = arith.constant 0 : index
    %c0_30 = arith.constant 0 : index
    %c0_31 = arith.constant 0 : index
    %40 = vector.load %arg6[%c0_29, %c0_30, %c0_31] : memref<1x12x48xf32, #tpu.memory_space<vmem>>, vector<1x12x48xf32>
    %41 = vector.shape_cast %40 : vector<1x12x48xf32> to vector<12x48xf32>
    %42 = vector.shape_cast %39 : vector<12x48xf32> to vector<1x12x48xf32>
    tpu.vector_store %arg6[%c0_29, %c0_30, %c0_31], %42 {strides = array<i32>} : memref<1x12x48xf32, #tpu.memory_space<vmem>>, vector<1x12x48xf32>,
    return
  }
  func.func @transform_0(%arg0: i32) -> (i32, i32, i32) {
    %c0_i32 = arith.constant 0 : i32
    %c0_i32_0 = arith.constant 0 : i32
    %c0_i32_1 = arith.constant 0 : i32
    return %arg0, %c0_i32, %c0_i32_0 : i32, i32, i32
  }
  func.func @transform_1(%arg0: i32) -> (i32, i32, i32) {
    %c0_i32 = arith.constant 0 : i32
    %c0_i32_0 = arith.constant 0 : i32
    %c0_i32_1 = arith.constant 0 : i32
    %c0_i32_2 = arith.constant 0 : i32
    return %c0_i32, %c0_i32_0, %c0_i32_1 : i32, i32, i32
  }
  func.func @transform_2(%arg0: i32) -> (i32, i32) {
    %c0_i32 = arith.constant 0 : i32
    %c0_i32_0 = arith.constant 0 : i32
    %c0_i32_1 = arith.constant 0 : i32
    return %c0_i32, %c0_i32_0 : i32, i32
  }
  func.func @transform_3(%arg0: i32) -> (i32, i32, i32) {
    %c0_i32 = arith.constant 0 : i32
    %c0_i32_0 = arith.constant 0 : i32
    %c0_i32_1 = arith.constant 0 : i32
    %c0_i32_2 = arith.constant 0 : i32
    return %c0_i32, %c0_i32_0, %c0_i32_1 : i32, i32, i32
  }
  func.func @transform_4(%arg0: i32) -> (i32, i32) {
    %c0_i32 = arith.constant 0 : i32
    %c0_i32_0 = arith.constant 0 : i32
    %c0_i32_1 = arith.constant 0 : i32
    return %c0_i32, %c0_i32_0 : i32, i32
  }
  func.func @transform_5(%arg0: i32) -> (i32, i32, i32) {
    %c0_i32 = arith.constant 0 : i32
    %c0_i32_0 = arith.constant 0 : i32
    %c0_i32_1 = arith.constant 0 : i32
    return %arg0, %c0_i32, %c0_i32_0 : i32, i32, i32
  }
}

</mosaic_0001>

<bundles_post_ra>
// kernel: tile.13
= control target key start
LH: loop header
LB: loop body
LE: loop exit
PB: predicated region body
PF: predicated region fallthrough
CT: control target
= control target key end

     0   :  { %s28_s0 = inlined_call_operand.vmem [shape: f32[4], index: 0, kind: input, shape index: {}]   ;;  %s29_s1 = inlined_call_operand.vmem [shape: f32[14,4], index: 1, kind: output, shape index: {}]  }
   0x1   :  { %v4_v0 = vld [vmem:[%s28_s0] ss:$0 sm:$0xff] }
   0x2   :  { %5 = vst [vmem:[%s29_s1] sm:$0xff] %v4_v0  ;;  %8 = vst [vmem:[%s29_s1 + $0x8] sm:$0xff] %v4_v0 }

// kernel: tile.14
= control target key start
LH: loop header
LB: loop body
LE: loop exit
PB: predicated region body
PF: predicated region fallthrough
CT: control target
= control target key end

     0   :  { %s117_s10 = smov 52   ;;  %s118_s11 = smov 44   ;;  %vm3_vm0 = vcmask 31744   ;;  %vm9_vm1 = vcmask 458144   ;;  %vm15_vm2 = vcmask 425344   ;;  %vm21_vm3 = vcmask 392544   ;;  %s185_s0 = inlined_call_operand.vmem [shape: f32[14,4], index: 0, kind: input, shape index: {}]   ;;  %s186_s1 = inlined_call_operand.vmem [shape: f32[1,56], index: 1, kind: output, shape index: {}]  }
   0x1   :  { %v91_v0 = vld [vmem:[%s185_s0 + $0xd] sm:$0x1]   ;;  %v93_v1 = vld [vmem:[%s185_s0 + $0xb] sm:$0x1]   ;;  %v92_v2 = vld [vmem:[%s185_s0 + $0xc] sm:$0x1]  }
   0x2   :  { %7 = vrot.lane.b32.xlu0 %v91_v0, %s117_s10  ;;  %19 = vrot.lane.b32.xlu1 %v93_v1, %s118_s11  ;;  %v94_v3 = vld [vmem:[%s185_s0 + $0xa] sm:$0x1]   ;;  %s119_s16 = smov 48   ;;  %s120_s17 = smov 40   ;;  %v95_v4 = vld [vmem:[%s185_s0 + $0x9] sm:$0x1]  }
   0x3   :  { %v96_v5 = vld [vmem:[%s185_s0 + $0x8] sm:$0x1]   ;;  %v2_v6 = vld [vmem:[%s185_s0] sm:$0x1]   ;;  %s121_s24 = smov 36   ;;  %s122_s25 = smov 32  }
   0x4   :  { %4 = vst.msk [vmem:[#allocation0] sm:$0x1] %vm3_vm0, %v2_v6   ;;  %v97_v7 = vld [vmem:[%s185_s0 + $0x7] sm:$0x1]   ;;  %v98_v8 = vld [vmem:[%s185_s0 + $0x6] sm:$0x1]  }
   0x5   :  { %s123_s30 = smov 28   ;;  %s124_s2 = smov 24   ;;  %v99_v9 = vld [vmem:[%s185_s0 + $0x5] sm:$0x1]   ;;  %v100_v10 = vld [vmem:[%s185_s0 + $0x4] sm:$0x1]  }
   0x6   :  { %13 = vrot.lane.b32.xlu0 %v92_v2, %s119_s16  ;;  %25 = vrot.lane.b32.xlu1 %v94_v3, %s120_s17  ;;  %s125_s7 = smov 20   ;;  %s126_s8 = smov 16   ;;  %v101_v11 = vld [vmem:[%s185_s0 + $0x3] sm:$0x1]   ;;  %v102_v12 = vld [vmem:[%s185_s0 + $0x2] sm:$0x1]  }
   0x7   :  { %s127_s13 = smov 12   ;;  %s128_s14 = smov 8   ;;  %v103_v13 = vld [vmem:[%s185_s0 + $0x1] sm:$0x1]   ;;  %vm27_vm4 = vcmask 359744   ;;  %vm33_vm5 = vcmask 326944  }
   0x8   :  { %s129_s0 = smov 4   ;;  %vm39_vm6 = vcmask 294144   ;;  %vm45_vm7 = vcmask 261344   ;;  %vm51_vm8 = vcmask 228544   ;;  %vm57_vm9 = vcmask 195744  }
   0x9   :  { %vm63_vm10 = vcmask 162944   ;;  %vm69_vm11 = vcmask 130144   ;;  %vm75_vm12 = vcmask 97344   ;;  %vm81_vm13 = vcmask 64544  }
   0xa   :  { %31 = vrot.lane.b32.xlu0 %v95_v4, %s121_s24  ;;  %37 = vrot.lane.b32.xlu1 %v96_v5, %s122_s25 }
   0xe   :  { %43 = vrot.lane.b32.xlu0 %v97_v7, %s123_s30  ;;  %49 = vrot.lane.b32.xlu1 %v98_v8, %s124_s2 }
  0x12   :  { %55 = vrot.lane.b32.xlu0 %v99_v9, %s125_s7  ;;  %61 = vrot.lane.b32.xlu1 %v100_v10, %s126_s8 }
  0x16   :  { %67 = vrot.lane.b32.xlu0 %v101_v11, %s127_s13  ;;  %73 = vrot.lane.b32.xlu1 %v102_v12, %s128_s14 }
  0x1a   :  { %79 = vrot.lane.b32.xlu0 %v103_v13, %s129_s0 }
  0x74   :  { %v8_v14 = vpop.permute.xlu0 %7   ;;  %v20_v15 = vpop.permute.xlu1 %19  }
  0x75   :  { %10 = vst.msk [vmem:[#allocation0] sm:$0x1] %vm9_vm1, %v8_v14  }
  0x78   :  { %v14_v16 = vpop.permute.xlu0 %13   ;;  %v26_v17 = vpop.permute.xlu1 %25  }
  0x79   :  { %16 = vst.msk [vmem:[#allocation0] sm:$0x1] %vm15_vm2, %v14_v16  }
  0x7a   :  { %22 = vst.msk [vmem:[#allocation0] sm:$0x1] %vm21_vm3, %v20_v15  }
  0x7b   :  { %28 = vst.msk [vmem:[#allocation0] sm:$0x1] %vm27_vm4, %v26_v17  }
  0x7c   :  { %v32_v18 = vpop.permute.xlu0 %31   ;;  %v38_v19 = vpop.permute.xlu1 %37  }
  0x7d   :  { %34 = vst.msk [vmem:[#allocation0] sm:$0x1] %vm33_vm5, %v32_v18  }
  0x7e   :  { %40 = vst.msk [vmem:[#allocation0] sm:$0x1] %vm39_vm6, %v38_v19  }
  0x80   :  { %v44_v20 = vpop.permute.xlu0 %43   ;;  %v50_v21 = vpop.permute.xlu1 %49  }
  0x81   :  { %46 = vst.msk [vmem:[#allocation0] sm:$0x1] %vm45_vm7, %v44_v20  }
  0x82   :  { %52 = vst.msk [vmem:[#allocation0] sm:$0x1] %vm51_vm8, %v50_v21  }
  0x84   :  { %v56_v22 = vpop.permute.xlu0 %55   ;;  %v62_v23 = vpop.permute.xlu1 %61  }
  0x85   :  { %58 = vst.msk [vmem:[#allocation0] sm:$0x1] %vm57_vm9, %v56_v22  }
  0x86   :  { %64 = vst.msk [vmem:[#allocation0] sm:$0x1] %vm63_vm10, %v62_v23  }
  0x88   :  { %v68_v24 = vpop.permute.xlu0 %67   ;;  %v74_v25 = vpop.permute.xlu1 %73  }
  0x89   :  { %70 = vst.msk [vmem:[#allocation0] sm:$0x1] %vm69_vm11, %v68_v24  }
  0x8a   :  { %76 = vst.msk [vmem:[#allocation0] sm:$0x1] %vm75_vm12, %v74_v25  }
  0x8c   :  { %v80_v26 = vpop.permute.xlu0 %79  }
  0x8d   :  { %82 = vst.msk [vmem:[#allocation0] sm:$0x1] %vm81_vm13, %v80_v26  }
  0x94   :  { %v87_v27 = vld [vmem:[#allocation0] sm:$0x1] }
  0x95   :  { %90 = vst [vmem:[%s186_s1] sm:$0x1] %v87_v27 }

// kernel: tile.18
= control target key start
LH: loop header
LB: loop body
LE: loop exit
PB: predicated region body
PF: predicated region fallthrough
CT: control target
= control target key end

     0   :  { %s28_s0 = inlined_call_operand.vmem [shape: f32[4], index: 0, kind: input, shape index: {}]   ;;  %s29_s1 = inlined_call_operand.vmem [shape: f32[12,4], index: 1, kind: output, shape index: {}]  }
   0x1   :  { %v4_v0 = vld [vmem:[%s28_s0] ss:$0 sm:$0xff] }
   0x2   :  { %5 = vst [vmem:[%s29_s1] sm:$0xff] %v4_v0  ;;  %8 = vst [vmem:[%s29_s1 + $0x8] sm:$0xff] %v4_v0 }

// kernel: tile.19
= control target key start
LH: loop header
LB: loop body
LE: loop exit
PB: predicated region body
PF: predicated region fallthrough
CT: control target
= control target key end

     0   :  { %s101_s10 = smov 44   ;;  %s102_s11 = smov 36   ;;  %vm3_vm0 = vcmask 31744   ;;  %vm9_vm1 = vcmask 392544   ;;  %vm15_vm2 = vcmask 359744   ;;  %vm21_vm3 = vcmask 326944   ;;  %s161_s0 = inlined_call_operand.vmem [shape: f32[12,4], index: 0, kind: input, shape index: {}]   ;;  %s162_s1 = inlined_call_operand.vmem [shape: f32[1,48], index: 1, kind: output, shape index: {}]  }
   0x1   :  { %v79_v0 = vld [vmem:[%s161_s0 + $0xb] sm:$0x1]   ;;  %v81_v1 = vld [vmem:[%s161_s0 + $0x9] sm:$0x1]   ;;  %v80_v2 = vld [vmem:[%s161_s0 + $0xa] sm:$0x1]  }
   0x2   :  { %7 = vrot.lane.b32.xlu0 %v79_v0, %s101_s10  ;;  %19 = vrot.lane.b32.xlu1 %v81_v1, %s102_s11  ;;  %v82_v3 = vld [vmem:[%s161_s0 + $0x8] sm:$0x1]   ;;  %s103_s16 = smov 40   ;;  %s104_s17 = smov 32   ;;  %v83_v4 = vld [vmem:[%s161_s0 + $0x7] sm:$0x1]  }
   0x3   :  { %v2_v5 = vld [vmem:[%s161_s0] sm:$0x1]   ;;  %v84_v6 = vld [vmem:[%s161_s0 + $0x6] sm:$0x1]   ;;  %s105_s24 = smov 28   ;;  %s106_s25 = smov 24  }
   0x4   :  { %4 = vst.msk [vmem:[#allocation0] sm:$0x1] %vm3_vm0, %v2_v5   ;;  %v85_v7 = vld [vmem:[%s161_s0 + $0x5] sm:$0x1]   ;;  %v86_v8 = vld [vmem:[%s161_s0 + $0x4] sm:$0x1]  }
   0x5   :  { %s107_s30 = smov 20   ;;  %s108_s2 = smov 16   ;;  %v87_v9 = vld [vmem:[%s161_s0 + $0x3] sm:$0x1]   ;;  %v88_v10 = vld [vmem:[%s161_s0 + $0x2] sm:$0x1]  }
   0x6   :  { %13 = vrot.lane.b32.xlu0 %v80_v2, %s103_s16  ;;  %25 = vrot.lane.b32.xlu1 %v82_v3, %s104_s17  ;;  %s109_s7 = smov 12   ;;  %s110_s8 = smov 8   ;;  %v89_v11 = vld [vmem:[%s161_s0 + $0x1] sm:$0x1]   ;;  %vm27_vm4 = vcmask 294144   ;;  %vm33_vm5 = vcmask 261344  }
   0x7   :  { %s111_s0 = smov 4   ;;  %vm39_vm6 = vcmask 228544   ;;  %vm45_vm7 = vcmask 195744   ;;  %vm51_vm8 = vcmask 162944   ;;  %vm57_vm9 = vcmask 130144  }
   0x8   :  { %vm63_vm10 = vcmask 97344   ;;  %vm69_vm11 = vcmask 64544  }
   0xa   :  { %31 = vrot.lane.b32.xlu0 %v83_v4, %s105_s24  ;;  %37 = vrot.lane.b32.xlu1 %v84_v6, %s106_s25 }
   0xe   :  { %43 = vrot.lane.b32.xlu0 %v85_v7, %s107_s30  ;;  %49 = vrot.lane.b32.xlu1 %v86_v8, %s108_s2 }
  0x12   :  { %55 = vrot.lane.b32.xlu0 %v87_v9, %s109_s7  ;;  %61 = vrot.lane.b32.xlu1 %v88_v10, %s110_s8 }
  0x16   :  { %67 = vrot.lane.b32.xlu0 %v89_v11, %s111_s0 }
  0x74   :  { %v8_v12 = vpop.permute.xlu0 %7   ;;  %v20_v13 = vpop.permute.xlu1 %19  }
  0x75   :  { %10 = vst.msk [vmem:[#allocation0] sm:$0x1] %vm9_vm1, %v8_v12  }
  0x78   :  { %v14_v14 = vpop.permute.xlu0 %13   ;;  %v26_v15 = vpop.permute.xlu1 %25  }
  0x79   :  { %16 = vst.msk [vmem:[#allocation0] sm:$0x1] %vm15_vm2, %v14_v14  }
  0x7a   :  { %22 = vst.msk [vmem:[#allocation0] sm:$0x1] %vm21_vm3, %v20_v13  }
  0x7b   :  { %28 = vst.msk [vmem:[#allocation0] sm:$0x1] %vm27_vm4, %v26_v15  }
  0x7c   :  { %v32_v16 = vpop.permute.xlu0 %31   ;;  %v38_v17 = vpop.permute.xlu1 %37  }
  0x7d   :  { %34 = vst.msk [vmem:[#allocation0] sm:$0x1] %vm33_vm5, %v32_v16  }
  0x7e   :  { %40 = vst.msk [vmem:[#allocation0] sm:$0x1] %vm39_vm6, %v38_v17  }
  0x80   :  { %v44_v18 = vpop.permute.xlu0 %43   ;;  %v50_v19 = vpop.permute.xlu1 %49  }
  0x81   :  { %46 = vst.msk [vmem:[#allocation0] sm:$0x1] %vm45_vm7, %v44_v18  }
  0x82   :  { %52 = vst.msk [vmem:[#allocation0] sm:$0x1] %vm51_vm8, %v50_v19  }
  0x84   :  { %v56_v20 = vpop.permute.xlu0 %55   ;;  %v62_v21 = vpop.permute.xlu1 %61  }
  0x85   :  { %58 = vst.msk [vmem:[#allocation0] sm:$0x1] %vm57_vm9, %v56_v20  }
  0x86   :  { %64 = vst.msk [vmem:[#allocation0] sm:$0x1] %vm63_vm10, %v62_v21  }
  0x88   :  { %v68_v22 = vpop.permute.xlu0 %67  }
  0x89   :  { %70 = vst.msk [vmem:[#allocation0] sm:$0x1] %vm69_vm11, %v68_v22  }
  0x90   :  { %v75_v23 = vld [vmem:[#allocation0] sm:$0x1] }
  0x91   :  { %78 = vst [vmem:[%s162_s1] sm:$0x1] %v75_v23 }

// kernel: unet_intermediary_forward.1
= control target key start
LH: loop header
LB: loop body
LE: loop exit
PB: predicated region body
PF: predicated region fallthrough
CT: control target
= control target key end

     0   :  { %s1220_s18 = smov 0   ;;  %s1480_s0 = inlined_call_operand.vmem [shape: f32[2,16,128], index: 0, kind: input, shape index: {}]   ;;  %s1481_s1 = inlined_call_operand.vmem [shape: f32[3,128,56], index: 1, kind: input, shape index: {}]   ;;  %s1482_s2 = inlined_call_operand.vmem [shape: f32[1,56], index: 2, kind: input, shape index: {}]   ;;  %s1483_s3 = inlined_call_operand.vmem [shape: f32[3,56,48], index: 3, kind: input, shape index: {}]   ;;  %s1484_s4 = inlined_call_operand.vmem [shape: f32[1,48], index: 4, kind: input, shape index: {}]   ;;  %s1485_s5 = inlined_call_operand.vmem [shape: f32[2,12,48], index: 5, kind: output, shape index: {}]  }
   0x1 LB: > { %s870_s19 = sadd.s32 4294967295, %s1188_s18   ;;  %p874_p0 = scmp.ge.s32.totalorder %s1188_s18, 1  ;;  %s1188_s18 = sphi %s1220_s18, %s15_s18  }
   0x2   : > { %p187_p1 = scmp.lt.s32.totalorder %s1188_s18, 3 }
   0x4   : > { %p188_p2 = pnand %p874_p0, %p187_p1 }
   0x5   : > { %p215_p3 = scmp.lt.s32.totalorder (!%p188_p2), %s870_s19, 1 }
   0x6   : > { %191 = sbr.rel (%p188_p2) target bundleno = 513 (0x201), region = 40 }
   0xb   : > { %v894_v0 = vld [vmem:[%s1481_s1 + $0xf8] sm:$0xff]  ;;  %v893_v2 = vld [vmem:[%s1481_s1 + $0xf0] sm:$0xff]  ;;  %v892_v4 = vld [vmem:[%s1481_s1 + $0xe8] sm:$0xff]  ;;  %s1487_s19 = smov (!%p215_p3, %s870_s19), 1  ;;  %vm262_vm0 = vcmask 1046528   ;;  %vm435_vm1 = vcmask 1045504  }
   0xc   : > { %v242_v1 = vld [vmem:[%s1481_s1 + $0x78] sm:$0xff]  ;;  %1018 = vmatprep.subr.mxu0 %v894_v0  ;;  %v241_v3 = vld [vmem:[%s1481_s1 + $0x70] sm:$0xff]  ;;  %v240_v5 = vld [vmem:[%s1481_s1 + $0x68] sm:$0xff]  ;;  %s935_s12 = sshll.u32 %s1487_s19, 4  ;;  %vm549_vm2 = vcmask 457728   ;;  %vm813_vm3 = vcmask 388096  }
   0xd   : > { %1053 = vmatprep.subr.mxu1 %v242_v1  ;;  %1019 = vmatpush3.msra.mxu0 %v894_v0  ;;  %v891_v6 = vld [vmem:[%s1481_s1 + $0xe0] sm:$0xff]  ;;  %v890_v8 = vld [vmem:[%s1481_s1 + $0xd8] sm:$0xff]  ;;  %v889_v10 = vld [vmem:[%s1481_s1 + $0xd0] sm:$0xff]  ;;  %s219_s21 = scalar_lea.vmem %s1480_s0, %s935_s12  ;;  %s224_s9 = scalar_lea.vmem %s1485_s5, %s935_s12  ;;  %vm811_vm4 = vcmask 392192  }
   0xe   : > { %1054 = vmatpush3.msra.mxu1 %v242_v1  ;;  %1020 = vmatprep.subr.mxu0 %v893_v2  ;;  %v239_v7 = vld [vmem:[%s1481_s1 + $0x60] sm:$0xff]  ;;  %v238_v9 = vld [vmem:[%s1481_s1 + $0x58] sm:$0xff]  ;;  %v237_v11 = vld [vmem:[%s1481_s1 + $0x50] sm:$0xff] }
   0xf   : > { %1055 = vmatprep.subr.mxu1 %v241_v3  ;;  %1021 = vmatpush3.msra.mxu0 %v893_v2  ;;  %v888_v12 = vld [vmem:[%s1481_s1 + $0xc8] sm:$0xff]  ;;  %v887_v14 = vld [vmem:[%s1481_s1 + $0xc0] sm:$0xff]  ;;  %v886_v16 = vld [vmem:[%s1481_s1 + $0xb8] sm:$0xff] }
  0x10   : > { %1056 = vmatpush3.msra.mxu1 %v241_v3  ;;  %1022 = vmatprep.subr.mxu0 %v892_v4  ;;  %v236_v13 = vld [vmem:[%s1481_s1 + $0x48] sm:$0xff]  ;;  %v235_v15 = vld [vmem:[%s1481_s1 + $0x40] sm:$0xff]  ;;  %v234_v17 = vld [vmem:[%s1481_s1 + $0x38] sm:$0xff] }
  0x11   : > { %1057 = vmatprep.subr.mxu1 %v240_v5  ;;  %1023 = vmatpush3.msra.mxu0 %v892_v4  ;;  %v885_v18 = vld [vmem:[%s1481_s1 + $0xb0] sm:$0xff]  ;;  %v884_v20 = vld [vmem:[%s1481_s1 + $0xa8] sm:$0xff]  ;;  %v883_v22 = vld [vmem:[%s1481_s1 + $0xa0] sm:$0xff] }
  0x12   : > { %1058 = vmatpush3.msra.mxu1 %v240_v5  ;;  %1024 = vmatprep.subr.mxu0 %v891_v6  ;;  %v233_v19 = vld [vmem:[%s1481_s1 + $0x30] sm:$0xff]  ;;  %v232_v21 = vld [vmem:[%s1481_s1 + $0x28] sm:$0xff]  ;;  %v231_v23 = vld [vmem:[%s1481_s1 + $0x20] sm:$0xff] }
  0x13   : > { %1059 = vmatprep.subr.mxu1 %v239_v7  ;;  %1025 = vmatpush3.msra.mxu0 %v891_v6  ;;  %v882_v24 = vld [vmem:[%s1481_s1 + $0x98] sm:$0xff]  ;;  %v225_v26 = vld [vmem:[%s219_s21] sm:$0xff]  ;;  %v1318_v27 = vld [vmem:[%s219_s21 + $0x8] sm:$0xff] }
  0x14   : > { %1060 = vmatpush3.msra.mxu1 %v239_v7  ;;  %1026 = vmatprep.subr.mxu0 %v890_v8  ;;  %v230_v25 = vld [vmem:[%s1481_s1 + $0x18] sm:$0xff]  ;;  %v881_v28 = vld [vmem:[%s1481_s1 + $0x90] sm:$0xff]  ;;  %v263_v30 = vrot.slane %v225_v26, 1  ;;  %v264_v31 = vrot.slane %v1318_v27, 1  ;;  %v880_v32 = vld [vmem:[%s1481_s1 + $0x88] sm:$0xff]  ;;  %v436_v36 = vrot.slane %v225_v26, 2 }
  0x15   : > { %1061 = vmatprep.subr.mxu1 %v238_v9  ;;  %1027 = vmatpush3.msra.mxu0 %v890_v8  ;;  %v229_v29 = vld [vmem:[%s1481_s1 + $0x10] sm:$0xff]  ;;  %v228_v33 = vld [vmem:[%s1481_s1 + $0x8] sm:$0xff]  ;;  %v879_v34 = vld [vmem:[%s1481_s1 + $0x80] sm:$0xff]  ;;  %v437_v37 = vrot.slane %v1318_v27, 2 }
  0x16   : > { %1062 = vmatpush3.msra.mxu1 %v238_v9  ;;  %1028 = vmatprep.subr.mxu0 %v889_v10  ;;  %v227_v35 = vld [vmem:[%s1481_s1] sm:$0xff]  ;;  %v265_v38 = vsel %vm262_vm0, %v263_v30, %v264_v31  ;;  %v910_v39 = vld [vmem:[%s1481_s1 + $0x178] sm:$0xff]  ;;  %v909_v41 = vld [vmem:[%s1481_s1 + $0x170] sm:$0xff] }
  0x17   : > { %1063 = vmatprep.subr.mxu1 %v237_v11  ;;  %1029 = vmatpush3.msra.mxu0 %v889_v10  ;;  %v438_v40 = vsel %vm435_vm1, %v436_v36, %v437_v37  ;;  %v908_v42 = vld [vmem:[%s1481_s1 + $0x168] sm:$0xff]  ;;  %v907_v43 = vld [vmem:[%s1481_s1 + $0x160] sm:$0xff]  ;;  %v906_v44 = vld [vmem:[%s1481_s1 + $0x158] sm:$0xff] }
  0x18   : > { %1064 = vmatpush3.msra.mxu1 %v237_v11  ;;  %1030 = vmatprep.subr.mxu0 %v888_v12  ;;  %v905_v45 = vld [vmem:[%s1481_s1 + $0x150] sm:$0xff]  ;;  %v904_v46 = vld [vmem:[%s1481_s1 + $0x148] sm:$0xff]  ;;  %v903_v47 = vld [vmem:[%s1481_s1 + $0x140] sm:$0xff] }
  0x19   : > { %1065 = vmatprep.subr.mxu1 %v236_v13  ;;  %1031 = vmatpush3.msra.mxu0 %v888_v12  ;;  %v902_v48 = vld [vmem:[%s1481_s1 + $0x138] sm:$0xff]  ;;  %v901_v49 = vld [vmem:[%s1481_s1 + $0x130] sm:$0xff]  ;;  %v900_v50 = vld [vmem:[%s1481_s1 + $0x128] sm:$0xff] }
  0x1a   : > { %1066 = vmatpush3.msra.mxu1 %v236_v13  ;;  %1032 = vmatprep.subr.mxu0 %v887_v14  ;;  %v899_v51 = vld [vmem:[%s1481_s1 + $0x120] sm:$0xff]  ;;  %v898_v52 = vld [vmem:[%s1481_s1 + $0x118] sm:$0xff]  ;;  %v897_v53 = vld [vmem:[%s1481_s1 + $0x110] sm:$0xff] }
  0x1b   : > { %1067 = vmatprep.subr.mxu1 %v235_v15  ;;  %1033 = vmatpush3.msra.mxu0 %v887_v14  ;;  %v896_v54 = vld [vmem:[%s1481_s1 + $0x108] sm:$0xff]  ;;  %v895_v55 = vld [vmem:[%s1481_s1 + $0x100] sm:$0xff]  ;;  %v916_v58 = vld [vmem:[%s1483_s3 + $0x58] sm:$0xff] }
  0x1c   : > { %1068 = vmatpush3.msra.mxu1 %v235_v15  ;;  %1034 = vmatprep.subr.mxu0 %v886_v16  ;;  %v918_v56 = vld [vmem:[%s1483_s3 + $0x68] sm:$0xff]  ;;  %v917_v57 = vld [vmem:[%s1483_s3 + $0x60] sm:$0xff]  ;;  %v915_v59 = vld [vmem:[%s1483_s3 + $0x50] sm:$0xff] }
  0x1d   : > { %1069 = vmatprep.subr.mxu1 %v234_v17  ;;  %1035 = vmatpush3.msra.mxu0 %v886_v16  ;;  %v914_v60 = vld [vmem:[%s1483_s3 + $0x48] sm:$0xff]  ;;  %v913_v61 = vld [vmem:[%s1483_s3 + $0x40] sm:$0xff]  ;;  %v912_v62 = vld [vmem:[%s1483_s3 + $0x38] sm:$0xff] }
  0x1e   : > { %1070 = vmatpush3.msra.mxu1 %v234_v17  ;;  %1036 = vmatprep.subr.mxu0 %v885_v18  ;;  %v535_v63 = vld [vmem:[%s1483_s3 + $0x30] sm:$0xff]  ;;  %v911_v6 = vld [vmem:[%s1482_s2] ss:$0 sm:$0xff]  ;;  %v926_v30 = vld [vmem:[%s1483_s3 + $0x88] sm:$0xff] }
  0x1f   : > { %1071 = vmatprep.subr.mxu1 %v233_v19  ;;  %1037 = vmatpush3.msra.mxu0 %v885_v18  ;;  %v534_v18 = vld [vmem:[%s1483_s3 + $0x28] sm:$0xff] }
  0x20   : > { %1072 = vmatpush3.msra.mxu1 %v233_v19  ;;  %1038 = vmatprep.subr.mxu0 %v884_v20  ;;  %v533_v19 = vld [vmem:[%s1483_s3 + $0x20] sm:$0xff] }
  0x21   : > { %1073 = vmatprep.subr.mxu1 %v232_v21  ;;  %1039 = vmatpush3.msra.mxu0 %v884_v20  ;;  %v532_v20 = vld [vmem:[%s1483_s3 + $0x18] sm:$0xff] }
  0x22   : > { %1074 = vmatpush3.msra.mxu1 %v232_v21  ;;  %1040 = vmatprep.subr.mxu0 %v883_v22  ;;  %v531_v21 = vld [vmem:[%s1483_s3 + $0x10] sm:$0xff] }
  0x23   : > { %1075 = vmatprep.subr.mxu1 %v231_v23  ;;  %1041 = vmatpush3.msra.mxu0 %v883_v22  ;;  %v530_v22 = vld [vmem:[%s1483_s3 + $0x8] sm:$0xff] }
  0x24   : > { %1076 = vmatpush3.msra.mxu1 %v231_v23  ;;  %1042 = vmatprep.subr.mxu0 %v882_v24  ;;  %v529_v23 = vld [vmem:[%s1483_s3] sm:$0xff] }
  0x25   : > { %1077 = vmatprep.subr.mxu1 %v230_v25  ;;  %1043 = vmatpush3.msra.mxu0 %v882_v24 }
  0x26   : > { %1078 = vmatpush3.msra.mxu1 %v230_v25  ;;  %1044 = vmatprep.subr.mxu0 %v881_v28  ;;  %v929_v25 = vld [vmem:[%s1483_s3 + $0xa0] sm:$0xff] }
  0x27   : > { %1079 = vmatprep.subr.mxu1 %v229_v29  ;;  %1045 = vmatpush3.msra.mxu0 %v881_v28 }
  0x28   : > { %1080 = vmatpush3.msra.mxu1 %v229_v29  ;;  %1046 = vmatprep.subr.mxu0 %v880_v32  ;;  %v927_v29 = vld [vmem:[%s1483_s3 + $0x90] sm:$0xff] }
  0x29   : > { %1081 = vmatprep.subr.mxu1 %v228_v33  ;;  %1047 = vmatpush3.msra.mxu0 %v880_v32  ;;  %v924_v32 = vld [vmem:[%s1483_s3 + $0x78] sm:$0xff] }
  0x2a   : > { %1082 = vmatpush3.msra.mxu1 %v228_v33  ;;  %1048 = vmatprep.subr.mxu0 %v879_v34  ;;  %v923_v33 = vld [vmem:[%s1483_s3 + $0x70] sm:$0xff] }
  0x2b   : > { %1083 = vmatprep.subr.mxu1 %v227_v35  ;;  %1049 = vmatpush3.msra.mxu0 %v879_v34 }
  0x2c   : > { %1050 = vmatprep.mubr.f32.mxu0 %v265_v38  ;;  %1084 = vmatpush3.msra.mxu1 %v227_v35 }
  0x2d   : > { %1085 = vmatprep.mubr.f32.mxu1 %v225_v26  ;;  %1051 = vmatmul.mubr.f32.vlgmr.msra.gmra.mxu0 %v264_v31  ;;  %v925_v31 = vld [vmem:[%s1483_s3 + $0x80] sm:$0xff] }
  0x2e   : > { %1086 = vmatmul.mubr.f32.vlgmr.msra.gmra.mxu1 %v1318_v27  ;;  %1088 = vmatprep.subr.mxu0 %v910_v39  ;;  %v928_v27 = vld [vmem:[%s1483_s3 + $0x98] sm:$0xff] }
  0x2f   : > { %1120 = vmatprep.mubr.f32.mxu0 %v438_v40  ;;  %1089 = vmatpush3.msra.mxu0 %v910_v39  ;;  %v932_v40 = vld [vmem:[%s1484_s4] ss:$0 sm:$0xff] }
  0x30   : > { %1090 = vmatprep.subr.mxu0 %v909_v41  ;;  %1123 = vmatprep.subr.mxu1 %v918_v56 }
  0x31   : > { %1091 = vmatpush3.msra.mxu0 %v909_v41  ;;  %1124 = vmatpush3.msra.mxu1 %v918_v56 }
  0x32   : > { %1092 = vmatprep.subr.mxu0 %v908_v42  ;;  %1125 = vmatprep.subr.mxu1 %v917_v57 }
  0x33   : > { %1093 = vmatpush3.msra.mxu0 %v908_v42  ;;  %1126 = vmatpush3.msra.mxu1 %v917_v57 }
  0x34   : > { %1094 = vmatprep.subr.mxu0 %v907_v43  ;;  %1127 = vmatprep.subr.mxu1 %v916_v58 }
  0x35   : > { %1095 = vmatpush3.msra.mxu0 %v907_v43  ;;  %1128 = vmatpush3.msra.mxu1 %v916_v58 }
  0x36   : > { %1096 = vmatprep.subr.mxu0 %v906_v44  ;;  %1129 = vmatprep.subr.mxu1 %v915_v59 }
  0x37   : > { %1097 = vmatpush3.msra.mxu0 %v906_v44  ;;  %1130 = vmatpush3.msra.mxu1 %v915_v59 }
  0x38   : > { %1098 = vmatprep.subr.mxu0 %v905_v45  ;;  %1131 = vmatprep.subr.mxu1 %v914_v60 }
  0x39   : > { %1099 = vmatpush3.msra.mxu0 %v905_v45  ;;  %1132 = vmatpush3.msra.mxu1 %v914_v60 }
  0x3a   : > { %1100 = vmatprep.subr.mxu0 %v904_v46  ;;  %1133 = vmatprep.subr.mxu1 %v913_v61 }
  0x3b   : > { %1101 = vmatpush3.msra.mxu0 %v904_v46  ;;  %1134 = vmatpush3.msra.mxu1 %v913_v61 }
  0x3c   : > { %1102 = vmatprep.subr.mxu0 %v903_v47  ;;  %1135 = vmatprep.subr.mxu1 %v912_v62 }
  0x3d   : > { %1103 = vmatpush3.msra.mxu0 %v903_v47  ;;  %1136 = vmatpush3.msra.mxu1 %v912_v62 }
  0x3e   : > { %1104 = vmatprep.subr.mxu0 %v902_v48  ;;  %1140 = vmatprep.subr.mxu1 %v535_v63 }
  0x3f   : > { %1105 = vmatpush3.msra.mxu0 %v902_v48 }
  0x40   : > { %1106 = vmatprep.subr.mxu0 %v901_v49 }
  0x41   : > { %1107 = vmatpush3.msra.mxu0 %v901_v49 }
  0x42   : > { %1108 = vmatprep.subr.mxu0 %v900_v50 }
  0x43   : > { %1109 = vmatpush3.msra.mxu0 %v900_v50 }
  0x44   : > { %1110 = vmatprep.subr.mxu0 %v899_v51 }
  0x45   : > { %1111 = vmatpush3.msra.mxu0 %v899_v51 }
  0x46   : > { %1112 = vmatprep.subr.mxu0 %v898_v52 }
  0x47   : > { %1113 = vmatpush3.msra.mxu0 %v898_v52 }
  0x48   : > { %1114 = vmatprep.subr.mxu0 %v897_v53 }
  0x49   : > { %1115 = vmatpush3.msra.mxu0 %v897_v53 }
  0x4a   : > { %1116 = vmatprep.subr.mxu0 %v896_v54 }
  0x4b   : > { %1117 = vmatpush3.msra.mxu0 %v896_v54 }
  0x4c   : > { %1118 = vmatprep.subr.mxu0 %v895_v55 }
  0x4d   : > { %1119 = vmatpush3.msra.mxu0 %v895_v55 }
  0x4e   : > { %1121 = vmatmul.mubr.f32.vlgmr.msra.gmra.mxu0 %v437_v37 }
  0xed   : > { %v1052_v0 = vpop.f32.mrf.mxu0 }
  0xee   : > { %v1087_v1 = vpop.f32.mrf.mxu1 }
  0xef   : > { %v334_v2 = vpop.f32.mrf.mxu0  ;;  %v415_v4 = vadd.f32 %v1087_v1, %v1052_v0 }
  0xf0   : > { %v409_v3 = vpop.f32.mrf.mxu1 }
  0xf1   : > { %v410_v7 = vadd.f32 %v409_v3, %v334_v2 }
 0x10e   : > { %v1122_v5 = vpop.f32.mrf.mxu0 }
 0x10f   : > { %v517_v8 = vadd.f32 %v1122_v5, %v415_v4 }
 0x110   : > { %v507_v9 = vpop.f32.mrf.mxu0 }
 0x111   : > { %v526_v10 = vadd.f32 %v911_v6, %v517_v8  ;;  %v516_v11 = vadd.f32 %v507_v9, %v410_v7 }
 0x113   : > { %v528_v12 = vmax.f32 %v526_v10, 0.0  ;;  %v525_v13 = vadd.f32 %v911_v6, %v516_v11 }
 0x115   : > { %v527_v14 = vmax.f32 %v525_v13, 0.0  ;;  %v547_v15 = vrot.slane %v528_v12, 1  ;;  %v717_v26 = vrot.slane %v528_v12, 2 }
 0x117   : > { %v546_v16 = vrot.slane %v527_v14, 1  ;;  %v716_v24 = vrot.slane %v527_v14, 2 }
 0x119   : > { %v548_v17 = vsel %vm262_vm0, %v546_v16, %v547_v15  ;;  %v718_v28 = vsel %vm435_vm1, %v716_v24, %v717_v26 }
 0x11a   : > { %1137 = vmatprep.mubr.msk.f32.mxu1 %vm549_vm2, %v548_v17 }
 0x11b   : > { %1138 = vmatmul.mubr.msk.f32.vlgmr.msra.gmra.mxu1 %vm549_vm2, %v547_v15 }
 0x11c   : > { %1141 = vmatpush3.msra.mxu1 %v535_v63  ;;  %1154 = vmatprep.mubr.msk.f32.mxu1 %vm549_vm2, %v527_v14 }
 0x11d   : > { %1142 = vmatprep.subr.mxu1 %v534_v18 }
 0x11e   : > { %1143 = vmatpush3.msra.mxu1 %v534_v18 }
 0x11f   : > { %1144 = vmatprep.subr.mxu1 %v533_v19 }
 0x120   : > { %1145 = vmatpush3.msra.mxu1 %v533_v19 }
 0x121   : > { %1146 = vmatprep.subr.mxu1 %v532_v20 }
 0x122   : > { %1147 = vmatpush3.msra.mxu1 %v532_v20 }
 0x123   : > { %1148 = vmatprep.subr.mxu1 %v531_v21 }
 0x124   : > { %1149 = vmatpush3.msra.mxu1 %v531_v21 }
 0x125   : > { %1150 = vmatprep.subr.mxu1 %v530_v22 }
 0x126   : > { %1151 = vmatpush3.msra.mxu1 %v530_v22 }
 0x127   : > { %1152 = vmatprep.subr.mxu1 %v529_v23 }
 0x128   : > { %1153 = vmatpush3.msra.mxu1 %v529_v23 }
 0x129   : > { %1155 = vmatmul.mubr.msk.f32.vlgmr.msra.gmra.mxu1 %vm549_vm2, %v528_v12  ;;  %1157 = vmatprep.subr.mxu1 %v929_v25 }
 0x12a   : > { %1158 = vmatpush3.msra.mxu1 %v929_v25  ;;  %1171 = vmatprep.mubr.msk.f32.mxu1 %vm549_vm2, %v718_v28 }
 0x12b   : > { %1159 = vmatprep.subr.mxu1 %v928_v27 }
 0x12c   : > { %1160 = vmatpush3.msra.mxu1 %v928_v27 }
 0x12d   : > { %1161 = vmatprep.subr.mxu1 %v927_v29 }
 0x12e   : > { %1162 = vmatpush3.msra.mxu1 %v927_v29 }
 0x12f   : > { %1163 = vmatprep.subr.mxu1 %v926_v30 }
 0x130   : > { %1164 = vmatpush3.msra.mxu1 %v926_v30 }
 0x131   : > { %1165 = vmatprep.subr.mxu1 %v925_v31 }
 0x132   : > { %1166 = vmatpush3.msra.mxu1 %v925_v31 }
 0x133   : > { %1167 = vmatprep.subr.mxu1 %v924_v32 }
 0x134   : > { %1168 = vmatpush3.msra.mxu1 %v924_v32 }
 0x135   : > { %1169 = vmatprep.subr.mxu1 %v923_v33 }
 0x136   : > { %1170 = vmatpush3.msra.mxu1 %v923_v33 }
 0x137   : > { %1172 = vmatmul.mubr.msk.f32.vlgmr.msra.gmra.mxu1 %vm549_vm2, %v717_v26 }
 0x1db   : > { %v1139_v34 = vpop.f32.mrf.mxu1 }
 0x1dd   : > { %v620_v35 = vpop.f32.mrf.mxu1 }
 0x1e9   : > { %v1156_v36 = vpop.f32.mrf.mxu1 }
 0x1ea   : > { %v705_v38 = vadd.f32 %v1156_v36, %v1139_v34 }
 0x1eb   : > { %v699_v37 = vpop.f32.mrf.mxu1 }
 0x1ec   : > { %v700_v41 = vadd.f32 %v699_v37, %v620_v35 }
 0x1f7   : > { %v1173_v39 = vpop.f32.mrf.mxu1 }
 0x1f8   : > { %v799_v42 = vadd.f32 %v1173_v39, %v705_v38 }
 0x1f9   : > { %v789_v43 = vpop.f32.mrf.mxu1 }
 0x1fa   : > { %v808_v44 = vadd.f32 %v932_v40, %v799_v42  ;;  %v798_v45 = vadd.f32 %v789_v43, %v700_v41 }
 0x1fc   : > { %v810_v46 = vmax.f32 %v808_v44, 0.0  ;;  %v807_v47 = vadd.f32 %v932_v40, %v798_v45 }
 0x1fe   : > { %814 = vst.msk [vmem:[%s224_s9 + $0x8] sm:$0xf] %vm813_vm3, %v810_v46  ;;  %v809_v48 = vmax.f32 %v807_v47, 0.0 }
 0x200   : > { %812 = vst.msk [vmem:[%s224_s9] sm:$0xff] %vm811_vm4, %v809_v48 }
 0x201 PF: > { %s15_s18 = sadd.s32 1, %s1188_s18  }
 0x202   : > { %p12_p4 = scmp.ge.s32.totalorder %s15_s18, 4  }
 0x204   :  { %14 = sbr.rel (!%p12_p4) target bundleno = 1 (0x1), region = 74 }

</bundles_post_ra>
